<compile_context>
chip_gen: v5e
topology: v5e:2x2
jax: 0.10.0
libtpu: 0.0.40
codegen_flags: <defaults>
</compile_context>

<pallas_src>
import functools
import math

import jax
import jax.numpy as jnp
from jax import lax
from jax.experimental import pallas as pl
from jax.experimental.pallas import tpu as pltpu


# ---------------------------------------------------------------------------
# tiling helpers
# ---------------------------------------------------------------------------
def _row_tile(m):
    for t in (512, 256, 128):
        if m % t == 0:
            return t
    return m  # small / ragged -> whole extent (valid: equals full dim)


def _seq_tile(L):
    for t in (512, 256, 128):
        if L % t == 0:
            return t
    return L


# ---------------------------------------------------------------------------
# fused QKV projection kernel:  q, k, v = x @ w_qkv + b_qkv  (split on columns)
# ---------------------------------------------------------------------------
def _qkv_proj_kernel(x_ref, w_ref, b_ref, q_ref, k_ref, v_ref):
    acc = jnp.dot(x_ref[...], w_ref[...], preferred_element_type=jnp.float32)
    acc = acc + b_ref[...].astype(jnp.float32)
    dm = q_ref.shape[-1]
    q_ref[...] = acc[:, 0 * dm:1 * dm].astype(q_ref.dtype)
    k_ref[...] = acc[:, 1 * dm:2 * dm].astype(k_ref.dtype)
    v_ref[...] = acc[:, 2 * dm:3 * dm].astype(v_ref.dtype)


def qkv_projection(x2d, w_qkv, b_qkv, d_model, out_dtype=None):
    """x2d: (M, d_model); w_qkv: (d_model, 3*d_model); b_qkv: (3*d_model,)."""
    M, K = x2d.shape
    out_dtype = x2d.dtype if out_dtype is None else out_dtype
    tm = _row_tile(M)
    out_sd = jax.ShapeDtypeStruct((M, d_model), out_dtype)
    out_spec = pl.BlockSpec((tm, d_model), lambda i: (i, 0))
    return pl.pallas_call(
        _qkv_proj_kernel,
        out_shape=(out_sd, out_sd, out_sd),
        grid_spec=pltpu.PrefetchScalarGridSpec(
            num_scalar_prefetch=0,
            grid=(M // tm,),
            in_specs=[
                pl.BlockSpec((tm, K), lambda i: (i, 0)),
                pl.BlockSpec((K, 3 * d_model), lambda i: (0, 0)),
                pl.BlockSpec((1, 3 * d_model), lambda i: (0, 0)),
            ],
            out_specs=(out_spec, out_spec, out_spec),
        ),
        compiler_params=pltpu.CompilerParams(
            dimension_semantics=("parallel",)),
    )(x2d, w_qkv, b_qkv.reshape(1, -1))


# ---------------------------------------------------------------------------
# flash-style causal multi-head attention kernel with fused c_proj epilogue
# q/k/v layout: (B, L, n_head*head_dim) -- head h lives in columns
# [h*head_dim, (h+1)*head_dim), identical to torch's .view(B, L, H, D).
# Grid = (batch, lower-triangular (qi, ki) pair); m/l/acc scratch carries the
# online-softmax state across the ki sweep of each q tile.
# ---------------------------------------------------------------------------
def _flash_causal_mha_cproj_kernel(qi_tbl, ki_tbl,
                                   q_ref, k_ref, v_ref, wc_ref, bc_ref,
                                   o_ref, m_ref, l_ref, acc_ref,
                                   *, n_head, head_dim, tq, tk):
    pidx = pl.program_id(1)
    qi = qi_tbl[pidx]
    ki = ki_tbl[pidx]

    @pl.when(ki == 0)
    def _init():
        m_ref[...] = jnp.full(m_ref.shape, -jnp.inf, m_ref.dtype)
        l_ref[...] = jnp.zeros(l_ref.shape, l_ref.dtype)
        acc_ref[...] = jnp.zeros(acc_ref.shape, acc_ref.dtype)

    def process(diagonal):
        if diagonal:
            # causal mask built once per diagonal block, shared by all heads
            row = lax.broadcasted_iota(jnp.int32, (tq, tk), 0)
            col = lax.broadcasted_iota(jnp.int32, (tq, tk), 1)
            causal = col <= row
        pv_parts = []
        alpha_parts = []
        for h in range(n_head):
            c0 = h * head_dim
            q_h = q_ref[0, :, c0:c0 + head_dim]          # scale pre-folded
            k_h = k_ref[0, :, c0:c0 + head_dim]
            v_h = v_ref[0, :, c0:c0 + head_dim]
            s = lax.dot_general(
                q_h, k_h,
                dimension_numbers=(((1,), (1,)), ((), ())),
                preferred_element_type=jnp.float32)      # (tq, tk) f32
            if diagonal:
                s = jnp.where(causal, s, -jnp.inf)
            m_prev = m_ref[h]                            # (tq, 1)
            l_prev = l_ref[h]
            m_new = jnp.maximum(m_prev, jnp.max(s, axis=-1, keepdims=True))
            alpha = jnp.exp(m_prev - m_new)
            p_mat = jnp.exp(s - m_new)
            l_ref[h] = alpha * l_prev + jnp.sum(p_mat, axis=-1, keepdims=True)
            m_ref[h] = m_new
            pv_parts.append(jnp.dot(p_mat.astype(v_h.dtype), v_h,
                                    preferred_element_type=jnp.float32))
            alpha_parts.append(jnp.broadcast_to(alpha, (tq, head_dim)))
        # single lane-dense (tq, n_head*head_dim) FMA instead of 4 masked RMWs
        acc_ref[...] = (jnp.concatenate(alpha_parts, axis=-1) * acc_ref[...]
                        + jnp.concatenate(pv_parts, axis=-1))

    @pl.when(ki < qi)              # strictly below the diagonal: no mask
    def _off_diag():
        process(diagonal=False)

    @pl.when(ki == qi)             # diagonal block: mask + finalize; this is
    def _diag():                   # the last kv step contributing to qi
        process(diagonal=True)
        # exact softmax normalization (approx reciprocal removed for parity)
        inv_parts = [jnp.broadcast_to(1.0 / l_ref[h], (tq, head_dim))
                     for h in range(n_head)]
        y = acc_ref[...] * jnp.concatenate(inv_parts, axis=-1)   # (tq, Dm) f32
        # fused c_proj: saves one HBM round-trip of y and a kernel launch
        out = jnp.dot(y.astype(wc_ref.dtype), wc_ref[...],
                      preferred_element_type=jnp.float32)
        out = out + bc_ref[...].astype(jnp.float32)
        o_ref[0] = out.astype(o_ref.dtype)
    # ki > qi pairs never exist: the pair table only enumerates the lower
    # triangle, so no grid step (and no DMA) is wasted above the diagonal.


def causal_mha_cproj(q, k, v, w_c, b_c, n_head, out_dtype=None):
    """q, k, v: (B, L, d_model) with heads packed on the last dim."""
    B, L, Dm = q.shape
    out_dtype = q.dtype if out_dtype is None else out_dtype
    head_dim = Dm // n_head
    t = _seq_tile(L)
    n_tiles = L // t

    # flattened lower-triangular (qi, ki) pair table (scalar-prefetched);
    # within each qi sweep, ki runs 0..qi with the diagonal last.
    pairs = [(qi, ki) for qi in range(n_tiles) for ki in range(qi + 1)]
    qi_tbl = jnp.asarray([pr[0] for pr in pairs], dtype=jnp.int32)
    ki_tbl = jnp.asarray([pr[1] for pr in pairs], dtype=jnp.int32)
    n_pairs = len(pairs)

    q_spec = pl.BlockSpec((1, t, Dm), lambda b, p, qi, ki: (b, qi[p], 0))
    kv_spec = pl.BlockSpec((1, t, Dm), lambda b, p, qi, ki: (b, ki[p], 0))
    o_spec = pl.BlockSpec((1, t, Dm), lambda b, p, qi, ki: (b, qi[p], 0))
    wc_spec = pl.BlockSpec((Dm, Dm), lambda b, p, qi, ki: (0, 0))
    bc_spec = pl.BlockSpec((1, Dm), lambda b, p, qi, ki: (0, 0))

    kernel = functools.partial(_flash_causal_mha_cproj_kernel,
                               n_head=n_head, head_dim=head_dim, tq=t, tk=t)
    return pl.pallas_call(
        kernel,
        out_shape=jax.ShapeDtypeStruct((B, L, Dm), out_dtype),
        grid_spec=pltpu.PrefetchScalarGridSpec(
            num_scalar_prefetch=2,
            grid=(B, n_pairs),
            in_specs=[q_spec, kv_spec, kv_spec, wc_spec, bc_spec],
            out_specs=o_spec,
            scratch_shapes=[
                pltpu.VMEM((n_head, t, 1), jnp.float32),   # running max m
                pltpu.VMEM((n_head, t, 1), jnp.float32),   # running sum l
                pltpu.VMEM((t, Dm), jnp.float32),          # output accumulator
            ],
        ),
        compiler_params=pltpu.CompilerParams(
            dimension_semantics=("parallel", "arbitrary"),
            vmem_limit_bytes=64 * 1024 * 1024),
    )(qi_tbl, ki_tbl, q, k, v, w_c, b_c.reshape(1, Dm))


# ---------------------------------------------------------------------------
# full AttentionLayer forward
# weights stored as (in_features, out_features), i.e. torch weight transposed
# ---------------------------------------------------------------------------
def attention_layer_forward(x, params, n_head, attn_dtype=None):
    B, L, Dm = x.shape
    head_dim = Dm // n_head
    attn_dtype = x.dtype if attn_dtype is None else attn_dtype
    scale = 1.0 / math.sqrt(head_dim)
    # fold 1/sqrt(head_dim) into w_q/b_q (one-time host-side scale)
    w_qkv = jnp.concatenate(
        [params["w_q"] * scale, params["w_k"], params["w_v"]], axis=1)
    b_qkv = jnp.concatenate(
        [params["b_q"] * scale, params["b_k"], params["b_v"]], axis=0)

    x2d = x.reshape(B * L, Dm)
    q2d, k2d, v2d = qkv_projection(x2d, w_qkv, b_qkv, Dm, out_dtype=attn_dtype)
    q = q2d.reshape(B, L, Dm)
    k = k2d.reshape(B, L, Dm)
    v = v2d.reshape(B, L, Dm)

    # attention + c_proj fused in a single Pallas call
    y = causal_mha_cproj(q, k, v, params["w_c"], params["b_c"], n_head,
                         out_dtype=x.dtype)
    # TODO(synk): nn.Dropout(config.dropout) not applied (eval mode, p = 0).
    return y


# ---------------------------------------------------------------------------
# pure-JAX reference mirroring the PyTorch forward (dropout=0, causal SDPA)
# ---------------------------------------------------------------------------
def _reference_forward(x, params, n_head):
    B, L, Dm = x.shape
    hd = Dm // n_head
    q = x @ params["w_q"] + params["b_q"]
    k = x @ params["w_k"] + params["b_k"]
    v = x @ params["w_v"] + params["b_v"]

    def split(t):
        return t.reshape(B, L, n_head, hd).transpose(0, 2, 1, 3)

    qh, kh, vh = split(q), split(k), split(v)
    s = jnp.einsum("bhqd,bhkd->bhqk", qh, kh) / math.sqrt(hd)
    mask = jnp.tril(jnp.ones((L, L), dtype=bool))
    s = jnp.where(mask[None, None], s, -jnp.inf)
    p = jax.nn.softmax(s, axis=-1)
    y = jnp.einsum("bhqk,bhkd->bhqd", p, vh)
    y = y.transpose(0, 2, 1, 3).reshape(B, L, Dm)
    return y @ params["w_c"] + params["b_c"]


if __name__ == "__main__":
    # Small shapes implied by the module: d_model=128, n_head=4 (head_dim=32)
    B, L, n_head, d_model = 2, 8, 4, 128

    key = jax.random.PRNGKey(0)
    ks = jax.random.split(key, 9)
    std = 1.0 / math.sqrt(d_model)
    params = {
        "w_q": jax.random.normal(ks[0], (d_model, d_model), jnp.float32) * std,
        "b_q": jax.random.normal(ks[1], (d_model,), jnp.float32) * std,
        "w_k": jax.random.normal(ks[2], (d_model, d_model), jnp.float32) * std,
        "b_k": jax.random.normal(ks[3], (d_model,), jnp.float32) * std,
        "w_v": jax.random.normal(ks[4], (d_model, d_model), jnp.float32) * std,
        "b_v": jax.random.normal(ks[5], (d_model,), jnp.float32) * std,
        "w_c": jax.random.normal(ks[6], (d_model, d_model), jnp.float32) * std,
        "b_c": jax.random.normal(ks[7], (d_model,), jnp.float32) * std,
    }
    x = jax.random.normal(ks[8], (B, L, d_model), jnp.float32)

    # f32 operands in the demo for tight parity with the f32 reference
    # (attn_dtype=jnp.bfloat16 is available to halve q/k/v HBM traffic).
    y = attention_layer_forward(x, params, n_head)
    y = jax.block_until_ready(y)

    y_ref = _reference_forward(x, params, n_head)
    assert y.shape == (B, L, d_model)
    err = float(jnp.max(jnp.abs(y - y_ref)))
    # tolerance covers MXU default-precision accumulation-order differences
    assert jnp.allclose(y, y_ref, atol=1e-2, rtol=1e-2), err

    print("KERNEL_OK")
</pallas_src>

<mosaic_0001>
module attributes {stable_mosaic.version = 11 : i64} {
  func.func @_qkv_proj_kernel(%arg0: i32, %arg1: memref<16x128xf32, #tpu.memory_space<vmem>>, %arg2: memref<128x384xf32, #tpu.memory_space<vmem>>, %arg3: memref<1x384xf32, #tpu.memory_space<vmem>>, %arg4: memref<16x128xf32, #tpu.memory_space<vmem>>, %arg5: memref<16x128xf32, #tpu.memory_space<vmem>>, %arg6: memref<16x128xf32, #tpu.memory_space<vmem>>) attributes {dimension_semantics = [#tpu.dimension_semantics<parallel>], iteration_bounds = array<i64: 1>, scalar_prefetch = 0 : i64, scratch_operands = 0 : i64, tpu.core_type = #tpu.core_type<tc>, window_params = [{transform_indices = @transform_0, window_bounds = array<i64: 16, 128>}, {pipeline_mode = #tpu.pipeline_mode<synchronous>, transform_indices = @transform_1, window_bounds = array<i64: 128, 384>}, {pipeline_mode = #tpu.pipeline_mode<synchronous>, transform_indices = @transform_2, window_bounds = array<i64: 1, 384>}, {transform_indices = @transform_3, window_bounds = array<i64: 16, 128>}, {transform_indices = @transform_4, window_bounds = array<i64: 16, 128>}, {transform_indices = @transform_5, window_bounds = array<i64: 16, 128>}]} {
    %c0 = arith.constant 0 : index
    %c0_0 = arith.constant 0 : index
    %0 = vector.load %arg1[%c0, %c0_0] : memref<16x128xf32, #tpu.memory_space<vmem>>, vector<16x128xf32>
    %c0_1 = arith.constant 0 : index
    %c0_2 = arith.constant 0 : index
    %1 = vector.load %arg2[%c0_1, %c0_2] : memref<128x384xf32, #tpu.memory_space<vmem>>, vector<128x384xf32>
    %cst = arith.constant dense<0.000000e+00> : vector<16x384xf32>
    %2 = tpu.matmul %0, %1, %cst {dimension_numbers = #tpu.dot_dimension_numbers<[1], [0], [0], [1], [0, 0, 1, 1], [], []>} : vector<16x128xf32>, vector<128x384xf32>, vector<16x384xf32> -> vector<16x384xf32>
    %c0_3 = arith.constant 0 : index
    %c0_4 = arith.constant 0 : index
    %3 = vector.load %arg3[%c0_3, %c0_4] : memref<1x384xf32, #tpu.memory_space<vmem>>, vector<1x384xf32>
    %4 = vector.broadcast %3 : vector<1x384xf32> to vector<16x384xf32>
    %5 = arith.addf %2, %4 : vector<16x384xf32>
    %6 = vector.extract_strided_slice %5 {offsets = [0, 0], sizes = [16, 128], strides = [1, 1]} : vector<16x384xf32> to vector<16x128xf32>
    %c0_5 = arith.constant 0 : index
    %c0_6 = arith.constant 0 : index
    %7 = vector.load %arg4[%c0_5, %c0_6] : memref<16x128xf32, #tpu.memory_space<vmem>>, vector<16x128xf32>
    tpu.vector_store %arg4[%c0_5, %c0_6], %6 {strides = array<i32>} : memref<16x128xf32, #tpu.memory_space<vmem>>, vector<16x128xf32>,
    %8 = vector.extract_strided_slice %5 {offsets = [0, 128], sizes = [16, 128], strides = [1, 1]} : vector<16x384xf32> to vector<16x128xf32>
    %c0_7 = arith.constant 0 : index
    %c0_8 = arith.constant 0 : index
    %9 = vector.load %arg5[%c0_7, %c0_8] : memref<16x128xf32, #tpu.memory_space<vmem>>, vector<16x128xf32>
    tpu.vector_store %arg5[%c0_7, %c0_8], %8 {strides = array<i32>} : memref<16x128xf32, #tpu.memory_space<vmem>>, vector<16x128xf32>,
    %10 = vector.extract_strided_slice %5 {offsets = [0, 256], sizes = [16, 128], strides = [1, 1]} : vector<16x384xf32> to vector<16x128xf32>
    %c0_9 = arith.constant 0 : index
    %c0_10 = arith.constant 0 : index
    %11 = vector.load %arg6[%c0_9, %c0_10] : memref<16x128xf32, #tpu.memory_space<vmem>>, vector<16x128xf32>
    tpu.vector_store %arg6[%c0_9, %c0_10], %10 {strides = array<i32>} : memref<16x128xf32, #tpu.memory_space<vmem>>, vector<16x128xf32>,
    return
  }
  func.func @transform_0(%arg0: i32) -> (i32, i32) {
    %c0_i32 = arith.constant 0 : i32
    %c0_i32_0 = arith.constant 0 : i32
    return %arg0, %c0_i32 : i32, i32
  }
  func.func @transform_1(%arg0: i32) -> (i32, i32) {
    %c0_i32 = arith.constant 0 : i32
    %c0_i32_0 = arith.constant 0 : i32
    %c0_i32_1 = arith.constant 0 : i32
    return %c0_i32, %c0_i32_0 : i32, i32
  }
  func.func @transform_2(%arg0: i32) -> (i32, i32) {
    %c0_i32 = arith.constant 0 : i32
    %c0_i32_0 = arith.constant 0 : i32
    %c0_i32_1 = arith.constant 0 : i32
    return %c0_i32, %c0_i32_0 : i32, i32
  }
  func.func @transform_3(%arg0: i32) -> (i32, i32) {
    %c0_i32 = arith.constant 0 : i32
    %c0_i32_0 = arith.constant 0 : i32
    return %arg0, %c0_i32 : i32, i32
  }
  func.func @transform_4(%arg0: i32) -> (i32, i32) {
    %c0_i32 = arith.constant 0 : i32
    %c0_i32_0 = arith.constant 0 : i32
    return %arg0, %c0_i32 : i32, i32
  }
  func.func @transform_5(%arg0: i32) -> (i32, i32) {
    %c0_i32 = arith.constant 0 : i32
    %c0_i32_0 = arith.constant 0 : i32
    return %arg0, %c0_i32 : i32, i32
  }
}

</mosaic_0001>

<bundles_post_ra>
// kernel: tpu_custom_call.1
= control target key start
LH: loop header
LB: loop body
LE: loop exit
PB: predicated region body
PF: predicated region fallthrough
CT: control target
= control target key end

     0   :  { %11 = vsyncpa [#allocation3], 0  ;;  %s500_s0 = inlined_call_operand.hbm [shape: f32[16,128], index: 0, kind: input, shape index: {}]   ;;  %s501_s1 = inlined_call_operand.hbm [shape: f32[128,384], index: 1, kind: input, shape index: {}]   ;;  %s502_s2 = inlined_call_operand.hbm [shape: f32[1,384], index: 2, kind: input, shape index: {}]   ;;  %s503_s3 = inlined_call_operand.hbm [shape: f32[16,128], index: 3, kind: output, shape index: {0}]   ;;  %s504_s4 = inlined_call_operand.hbm [shape: f32[16,128], index: 4, kind: output, shape index: {1}]   ;;  %s505_s5 = inlined_call_operand.hbm [shape: f32[16,128], index: 5, kind: output, shape index: {2}]  }
   0x1   :  { %12 = vsyncpa [#allocation6], 0 }
   0x2   :  { %13 = vsyncpa [#allocation4], 0  ;;  %s32_s20 = sshll.u32 %s501_s1, 4  ;;  %s33_s20 = int_to_ptr.hbm [resolvable:$true] %s32_s20 }
   0x3   :  { %14 = vsyncpa [#allocation10], 0  ;;  %s430_s21 = smov [#allocation5]   ;;  %s19_s25 = sshll.u32 %s500_s0, 4  ;;  %s20_s25 = int_to_ptr.hbm [resolvable:$true] %s19_s25 }
   0x4   :  { %s34_s22 = sshll.u32 %s430_s21, 4  ;;  %s431_s26 = smov 384   ;;  %s35_s22 = int_to_ptr.vmem [resolvable:$true] %s34_s22 }
   0x5   :  { %s432_s27 = smov 24   ;;  %s433_s28 = smov [#allocation2]  }
   0x6   :  { %40 = dma.hbm_to_vmem [thread:$0]  %s33_s20, 6144, %s35_s22, [#allocation6], %s431_s26, %s431_s26, %s432_s27  }
   0x7   :  { %s21_s29 = sshll.u32 %s433_s28, 4  ;;  %s434_s30 = smov 128   ;;  %s22_s29 = int_to_ptr.vmem [resolvable:$true] %s21_s29 }
   0x8   :  { %s435_s6 = smov 8   ;;  %s46_s8 = sshll.u32 %s502_s2, 4  ;;  %s47_s8 = int_to_ptr.hbm [resolvable:$true] %s46_s8 }
   0x9   :  { %27 = dma.hbm_to_vmem [thread:$0]  %s20_s25, 256, %s22_s29, [#allocation3], %s434_s30, %s434_s30, %s435_s6  }
   0xa   :  { %s436_s9 = smov [#allocation7]  }
   0xb   :  { %s48_s0 = sshll.u32 %s436_s9, 4  ;;  %s49_s0 = int_to_ptr.vmem [resolvable:$true] %s48_s0 }
   0xc   :  { %51 = dma.hbm_to_vmem [thread:$0]  %s47_s8, 48, %s49_s0, [#allocation6]  }
   0xd   :  { %422 = dma.done.wait [#allocation3], 256  }
   0xe   :  { %423 = vsyncadd [#allocation3], 4294967040 }
   0xf   :  { %424 = dma.done.wait [#allocation6], 6192  }
  0x10   :  { %425 = vsyncadd [#allocation6], 4294961104  ;;  %v113_v0 = vld [vmem:[#allocation5 + $0x178] sm:$0xff]  ;;  %v110_v1 = vld [vmem:[#allocation5 + $0x160] sm:$0xff]  ;;  %s437_s2 = smov [#allocation8]   ;;  %s203_s13 = sshll.u32 %s503_s3, 4  ;;  %s204_s13 = int_to_ptr.hbm [resolvable:$true] %s203_s13 }
  0x11   :  { %168 = vmatpush.msra.mxu2 %v113_v0  ;;  %v112_v2 = vld [vmem:[#allocation5 + $0x170] sm:$0xff]  ;;  %v109_v3 = vld [vmem:[#allocation5 + $0x158] sm:$0xff]  ;;  %v107_v4 = vld [vmem:[#allocation5 + $0x148] sm:$0xff]  ;;  %s201_s10 = sshll.u32 %s437_s2, 4  ;;  %s438_s14 = smov [#allocation9]   ;;  %s202_s10 = int_to_ptr.vmem [resolvable:$true] %s201_s10 }
  0x12   :  { %145 = vmatpush.msra.mxu1 %v112_v2  ;;  %v111_v5 = vld [vmem:[#allocation5 + $0x168] sm:$0xff]  ;;  %v106_v6 = vld [vmem:[#allocation5 + $0x140] sm:$0xff]  ;;  %v108_v7 = vld [vmem:[#allocation5 + $0x150] sm:$0xff]  ;;  %s214_s15 = sshll.u32 %s438_s14, 4  ;;  %s216_s18 = sshll.u32 %s504_s4, 4  ;;  %s215_s15 = int_to_ptr.vmem [resolvable:$true] %s214_s15  ;;  %s217_s18 = int_to_ptr.hbm [resolvable:$true] %s216_s18 }
  0x13   :  { %169 = vmatpush.msra.mxu2 %v110_v1  ;;  %252 = vmatpush.msra.mxu3 %v111_v5  ;;  %v104_v8 = vld [vmem:[#allocation5 + $0x130] sm:$0xff]  ;;  %v105_v9 = vld [vmem:[#allocation5 + $0x138] sm:$0xff]  ;;  %v103_v10 = vld [vmem:[#allocation5 + $0x128] sm:$0xff]  ;;  %s439_s19 = smov [#allocation11]   ;;  %s229_s22 = sshll.u32 %s505_s5, 4  ;;  %s230_s22 = int_to_ptr.hbm [resolvable:$true] %s229_s22 }
  0x14   :  { %146 = vmatpush.msra.mxu1 %v109_v3  ;;  %122 = vmatpush.msra.mxu0 %v111_v5  ;;  %v101_v11 = vld [vmem:[#allocation5 + $0x118] sm:$0xff]  ;;  %v102_v12 = vld [vmem:[#allocation5 + $0x120] sm:$0xff]  ;;  %v100_v13 = vld [vmem:[#allocation5 + $0x110] sm:$0xff]  ;;  %s227_s3 = sshll.u32 %s439_s19, 4  ;;  %s228_s3 = int_to_ptr.vmem [resolvable:$true] %s227_s3 }
  0x15   :  { %170 = vmatpush.msra.mxu2 %v107_v4  ;;  %253 = vmatpush.msra.mxu3 %v108_v7  ;;  %v98_v14 = vld [vmem:[#allocation5 + $0x100] sm:$0xff]  ;;  %v99_v15 = vld [vmem:[#allocation5 + $0x108] sm:$0xff]  ;;  %v97_v16 = vld [vmem:[#allocation5 + $0xf8] sm:$0xff] }
  0x16   :  { %147 = vmatpush.msra.mxu1 %v106_v6  ;;  %123 = vmatpush.msra.mxu0 %v108_v7  ;;  %v95_v17 = vld [vmem:[#allocation5 + $0xe8] sm:$0xff]  ;;  %v96_v18 = vld [vmem:[#allocation5 + $0xf0] sm:$0xff]  ;;  %v94_v19 = vld [vmem:[#allocation5 + $0xe0] sm:$0xff] }
  0x17   :  { %171 = vmatpush.msra.mxu2 %v104_v8  ;;  %254 = vmatpush.msra.mxu3 %v105_v9  ;;  %v92_v20 = vld [vmem:[#allocation5 + $0xd0] sm:$0xff]  ;;  %v93_v21 = vld [vmem:[#allocation5 + $0xd8] sm:$0xff]  ;;  %v91_v22 = vld [vmem:[#allocation5 + $0xc8] sm:$0xff] }
  0x18   :  { %148 = vmatpush.msra.mxu1 %v103_v10  ;;  %124 = vmatpush.msra.mxu0 %v105_v9  ;;  %v89_v23 = vld [vmem:[#allocation5 + $0xb8] sm:$0xff]  ;;  %v90_v24 = vld [vmem:[#allocation5 + $0xc0] sm:$0xff]  ;;  %v88_v25 = vld [vmem:[#allocation5 + $0xb0] sm:$0xff] }
  0x19   :  { %172 = vmatpush.msra.mxu2 %v101_v11  ;;  %255 = vmatpush.msra.mxu3 %v102_v12  ;;  %v86_v26 = vld [vmem:[#allocation5 + $0xa0] sm:$0xff]  ;;  %v87_v27 = vld [vmem:[#allocation5 + $0xa8] sm:$0xff]  ;;  %v85_v28 = vld [vmem:[#allocation5 + $0x98] sm:$0xff] }
  0x1a   :  { %149 = vmatpush.msra.mxu1 %v100_v13  ;;  %125 = vmatpush.msra.mxu0 %v102_v12  ;;  %v83_v29 = vld [vmem:[#allocation5 + $0x88] sm:$0xff]  ;;  %v84_v30 = vld [vmem:[#allocation5 + $0x90] sm:$0xff]  ;;  %v82_v31 = vld [vmem:[#allocation5 + $0x80] sm:$0xff] }
  0x1b   :  { %173 = vmatpush.msra.mxu2 %v98_v14  ;;  %256 = vmatpush.msra.mxu3 %v99_v15  ;;  %v80_v32 = vld [vmem:[#allocation5 + $0x70] sm:$0xff]  ;;  %v81_v33 = vld [vmem:[#allocation5 + $0x78] sm:$0xff]  ;;  %v79_v34 = vld [vmem:[#allocation5 + $0x68] sm:$0xff] }
  0x1c   :  { %150 = vmatpush.msra.mxu1 %v97_v16  ;;  %126 = vmatpush.msra.mxu0 %v99_v15  ;;  %v77_v35 = vld [vmem:[#allocation5 + $0x58] sm:$0xff]  ;;  %v78_v36 = vld [vmem:[#allocation5 + $0x60] sm:$0xff]  ;;  %v76_v37 = vld [vmem:[#allocation5 + $0x50] sm:$0xff] }
  0x1d   :  { %174 = vmatpush.msra.mxu2 %v95_v17  ;;  %257 = vmatpush.msra.mxu3 %v96_v18  ;;  %v74_v38 = vld [vmem:[#allocation5 + $0x40] sm:$0xff]  ;;  %v75_v39 = vld [vmem:[#allocation5 + $0x48] sm:$0xff]  ;;  %v73_v40 = vld [vmem:[#allocation5 + $0x38] sm:$0xff] }
  0x1e   :  { %151 = vmatpush.msra.mxu1 %v94_v19  ;;  %127 = vmatpush.msra.mxu0 %v96_v18  ;;  %v71_v41 = vld [vmem:[#allocation5 + $0x28] sm:$0xff]  ;;  %v72_v42 = vld [vmem:[#allocation5 + $0x30] sm:$0xff]  ;;  %v70_v43 = vld [vmem:[#allocation5 + $0x20] sm:$0xff] }
  0x1f   :  { %175 = vmatpush.msra.mxu2 %v92_v20  ;;  %258 = vmatpush.msra.mxu3 %v93_v21  ;;  %v68_v44 = vld [vmem:[#allocation5 + $0x10] sm:$0xff]  ;;  %v69_v45 = vld [vmem:[#allocation5 + $0x18] sm:$0xff]  ;;  %v67_v47 = vld [vmem:[#allocation5 + $0x8] sm:$0xff] }
  0x20   :  { %152 = vmatpush.msra.mxu1 %v91_v22  ;;  %128 = vmatpush.msra.mxu0 %v93_v21  ;;  %v64_v46 = vld [vmem:[#allocation2] sm:$0xff]  ;;  %v66_v48 = vld [vmem:[#allocation5] sm:$0xff]  ;;  %v65_v49 = vld [vmem:[#allocation2 + $0x8] sm:$0xff] }
  0x21   :  { %176 = vmatpush.msra.mxu2 %v89_v23  ;;  %259 = vmatpush.msra.mxu3 %v90_v24  ;;  %v114_v50 = vld [vmem:[#allocation7] sm:$0x7] }
  0x22   :  { %153 = vmatpush.msra.mxu1 %v88_v25  ;;  %129 = vmatpush.msra.mxu0 %v90_v24  ;;  %v117_v51 = vperm.slane %v114_v50, 1  ;;  %v116_v54 = vperm.slane %v114_v50, 0  ;;  %v118_v55 = vperm.slane %v114_v50, 2 }
  0x23   :  { %177 = vmatpush.msra.mxu2 %v86_v26  ;;  %260 = vmatpush.msra.mxu3 %v87_v27 }
  0x24   :  { %154 = vmatpush.msra.mxu1 %v85_v28  ;;  %130 = vmatpush.msra.mxu0 %v87_v27 }
  0x25   :  { %178 = vmatpush.msra.mxu2 %v83_v29  ;;  %261 = vmatpush.msra.mxu3 %v84_v30 }
  0x26   :  { %155 = vmatpush.msra.mxu1 %v82_v31  ;;  %131 = vmatpush.msra.mxu0 %v84_v30 }
  0x27   :  { %179 = vmatpush.msra.mxu2 %v80_v32  ;;  %262 = vmatpush.msra.mxu3 %v81_v33 }
  0x28   :  { %156 = vmatpush.msra.mxu1 %v79_v34  ;;  %132 = vmatpush.msra.mxu0 %v81_v33 }
  0x29   :  { %180 = vmatpush.msra.mxu2 %v77_v35  ;;  %263 = vmatpush.msra.mxu3 %v78_v36 }
  0x2a   :  { %157 = vmatpush.msra.mxu1 %v76_v37  ;;  %133 = vmatpush.msra.mxu0 %v78_v36 }
  0x2b   :  { %181 = vmatpush.msra.mxu2 %v74_v38  ;;  %264 = vmatpush.msra.mxu3 %v75_v39 }
  0x2c   :  { %158 = vmatpush.msra.mxu1 %v73_v40  ;;  %134 = vmatpush.msra.mxu0 %v75_v39 }
  0x2d   :  { %182 = vmatpush.msra.mxu2 %v71_v41  ;;  %265 = vmatpush.msra.mxu3 %v72_v42 }
  0x2e   :  { %159 = vmatpush.msra.mxu1 %v70_v43  ;;  %135 = vmatpush.msra.mxu0 %v72_v42 }
  0x2f   :  { %183 = vmatpush.msra.mxu2 %v68_v44  ;;  %266 = vmatpush.msra.mxu3 %v69_v45 }
  0x30   :  { %184 = vmatmul.f32.vlgmr.msra.gmra.mxu2 %v64_v46  ;;  %160 = vmatpush.msra.mxu1 %v67_v47 }
  0x31   :  { %161 = vmatmul.f32.vlgmr.msra.gmra.mxu1 %v64_v46  ;;  %267 = vmatpush.msra.mxu3 %v66_v48 }
  0x32   :  { %141 = vmatmul.f32.vlgmr.msra.gmra.mxu3 %v65_v49  ;;  %136 = vmatpush.msra.mxu0 %v69_v45 }
  0x34   :  { %137 = vmatpush.msra.mxu0 %v66_v48 }
  0x35   :  { %138 = vmatmul.f32.vlgmr.msra.gmra.mxu0 %v64_v46 }
  0x38   :  { %187 = vmatmul.f32.gmra.mxu2 %v65_v49 }
  0x39   :  { %164 = vmatmul.f32.gmra.mxu1 %v65_v49 }
  0xae   :  { %v162_v52 = vpop.f32.mrf.mxu1 }
  0xaf   :  { %v163_v53 = vadd.f32 %v162_v52, %v117_v51 }
  0xb1   :  { %193 = vst [vmem:[#allocation9] sm:$0xff] %v163_v53 }
  0xb2   :  { %v139_v56 = vpop.f32.mrf.mxu0 }
  0xb3   :  { %v185_v57 = vpop.f32.mrf.mxu2  ;;  %v140_v58 = vadd.f32 %v139_v56, %v116_v54 }
  0xb4   :  { %v186_v59 = vadd.f32 %v185_v57, %v118_v55 }
  0xb5   :  { %191 = vst [vmem:[#allocation8] sm:$0xff] %v140_v58  ;;  %v142_v60 = vpop.f32.mrf.mxu3 }
  0xb6   :  { %195 = vst [vmem:[#allocation11] sm:$0xff] %v186_v59  ;;  %v165_v61 = vpop.f32.mrf.mxu1  ;;  %v143_v62 = vadd.f32 %v142_v60, %v116_v54 }
  0xb7   :  { %v166_v63 = vadd.f32 %v165_v61, %v117_v51 }
  0xb8   :  { %192 = vst [vmem:[#allocation8 + $0x8] sm:$0xff] %v143_v62 }
  0xb9   :  { %194 = vst [vmem:[#allocation9 + $0x8] sm:$0xff] %v166_v63  ;;  %209 = dma.vmem_to_hbm [thread:$0]  %s202_s10, 256, %s204_s13, [#allocation4], %s434_s30, %s434_s30, %s435_s6  }
  0xba   :  { %222 = dma.vmem_to_hbm [thread:$0]  %s215_s15, 256, %s217_s18, [#allocation10], %s434_s30, %s434_s30, %s435_s6  }
  0xbb   :  { %v188_v0 = vpop.f32.mrf.mxu2 }
  0xbc   :  { %v189_v1 = vadd.f32 %v188_v0, %v118_v55 }
  0xbe   :  { %196 = vst [vmem:[#allocation11 + $0x8] sm:$0xff] %v189_v1 }
  0xbf   :  { %235 = dma.vmem_to_hbm [thread:$0]  %s228_s3, 256, %s230_s22, [#allocation10], %s434_s30, %s434_s30, %s435_s6  }
  0xc0   :  { %426 = dma.done.wait [#allocation4], 256  }
  0xc1   :  { %427 = vsyncadd [#allocation4], 4294967040 }
  0xc2   :  { %428 = dma.done.wait [#allocation10], 512  }
  0xc3   :  { %429 = vsyncadd [#allocation10], 4294966784 }
  0xc4   :  { %248 = vsyncpa [#allocation3], 1 }
  0xc5   :  { %249 = vsyncpa [#allocation6], 1 }
  0xc6   :  { %250 = vsyncpa [#allocation4], 1 }
  0xc7   :  { %251 = vsyncpa [#allocation10], 1 }

</bundles_post_ra>
